<compile_context>
chip_gen: v7x
topology: tpu7x:2x2x1
jax: 0.10.0
libtpu: 0.0.40
codegen_flags: <defaults>
</compile_context>

<pallas_src>
import math

import jax
import jax.numpy as jnp
from jax.experimental import pallas as pl
from jax.experimental.pallas import tpu as pltpu


def _score_kernel(x_ref, ws_ref, o_ref):
    # (tile_n, H) * (1, H) broadcast multiply on the VPU, cross-lane reduce on
    # the XLU.  Avoids the narrow-RHS MXU matvec cadence bottleneck and keeps
    # the kernel HBM-bandwidth bound on all generations.  f32 accumulate.
    x = x_ref[...].astype(jnp.float32)          # (tile_n, H)
    ws = ws_ref[...]                            # (1, H), f32, VMEM-resident
    o_ref[...] = jnp.sum(x * ws, axis=-1, keepdims=True).astype(o_ref.dtype)


def _round_up(v, m):
    return pl.cdiv(v, m) * m


def _vmem_capacity_bytes():
    # Generation-aware VMEM capacity; conservative fallback = v7x per-TC 64 MiB.
    try:
        cap = getattr(pltpu.get_tpu_info(), "vmem_capacity_bytes", None)
        if cap:
            return int(cap)
    except Exception:
        pass
    return 64 << 20


def discriminator_forward(x, weight, summary, *, tile_n=4096):
    """x: (N, H), weight: (H, H), summary: (H,)  ->  (N,) scores."""
    n, h = x.shape
    assert weight.shape == (h, h)
    assert summary.shape == (h,)

    x_bytes = jnp.dtype(x.dtype).itemsize
    # dtype-aware sublane multiple: 8 rows f32, 16 bf16, 32 int8/fp8.
    sublane = {4: 8, 2: 16, 1: 32}.get(x_bytes, 8)

    # Hoisted tiny matvec: ws = W @ summary, kept in f32 (only H floats of
    # traffic vs. streaming all of x).  Recomputing it per grid step inside
    # the kernel is only worth it in the launch-bound tiny-N regime.
    ws_row = jnp.dot(
        weight.astype(jnp.float32), summary.astype(jnp.float32),
        preferred_element_type=jnp.float32,
    ).reshape(1, h)

    # ---- tile_n selection --------------------------------------------------
    #  a) double-buffered x tile fits in ~1/4 of the scoped-VMEM budget,
    #  b) at least 2 grid steps so v7x megacore gets work on both cores,
    #  c) rounded to the dtype sublane multiple; x is never padded or copied.
    budget = min(_vmem_capacity_bytes() // 2, 64 << 20)
    max_rows_vmem = max(
        sublane, ((budget // 2) // (2 * h * x_bytes)) // sublane * sublane
    )
    min_two_steps = _round_up(pl.cdiv(n, 2), sublane)
    tile_n = max(
        sublane, min(_round_up(tile_n, sublane), max_rows_vmem, min_two_steps)
    )

    grid = (pl.cdiv(n, tile_n),)  # partial last tile handled by Pallas masking

    cost = pl.CostEstimate(
        flops=2 * n * h,
        transcendentals=0,
        bytes_accessed=n * h * x_bytes + h * 4 + n * x_bytes,
    )

    out = pl.pallas_call(
        _score_kernel,
        out_shape=jax.ShapeDtypeStruct((n, 1), x.dtype),
        grid=grid,
        in_specs=[
            # x streamed tile-by-tile over N (auto double-buffered).  Full-H
            # block: legal even when H % 128 != 0, so no HBM pad/copy of x.
            pl.BlockSpec((tile_n, h), lambda i: (i, 0)),
            # ws: same block every step -> resident in VMEM, one DMA total.
            pl.BlockSpec((1, h), lambda i: (0, 0)),
        ],
        out_specs=pl.BlockSpec((tile_n, 1), lambda i: (i, 0)),
        compiler_params=pltpu.CompilerParams(
            # Independent output tiles -> shard N across TensorCores on v7x;
            # harmless on single-TC v5e/v6e.
            dimension_semantics=("parallel",),
            vmem_limit_bytes=int(budget),
        ),
        cost_estimate=cost,
    )(x, ws_row)

    return out[:, 0]


def init_discriminator_weight(key, hidden_dim, dtype=jnp.float32):
    # Mirrors torch_geometric's `uniform(size, weight)`:
    # U(-1/sqrt(size), 1/sqrt(size)) with size = hidden_dim.
    bound = 1.0 / math.sqrt(hidden_dim)
    return jax.random.uniform(key, (hidden_dim, hidden_dim),
                              minval=-bound, maxval=bound, dtype=dtype)


if __name__ == "__main__":
    key = jax.random.PRNGKey(0)

    # Case 1: small shapes matching the module's toy usage (H=32, N=16).
    hidden_dim, num_nodes = 32, 16
    k_w, k_x, k_s, key = jax.random.split(key, 4)
    weight = init_discriminator_weight(k_w, hidden_dim)
    x = jax.random.normal(k_x, (num_nodes, hidden_dim), dtype=jnp.float32)
    summary = jax.random.normal(k_s, (hidden_dim,), dtype=jnp.float32)

    out = discriminator_forward(x, weight, summary)
    jax.block_until_ready(out)
    ref = x @ (weight @ summary)
    assert out.shape == (num_nodes,)
    assert jnp.allclose(out, ref, atol=1e-4, rtol=1e-4)

    # Case 2: non-multiple H and N with a forced small tile -> 5 grid steps
    # including a partial (masked) last tile; no padding anywhere.
    hidden_dim2, num_nodes2 = 96, 300
    k_w2, k_x2, k_s2, key = jax.random.split(key, 4)
    weight2 = init_discriminator_weight(k_w2, hidden_dim2)
    x2 = jax.random.normal(k_x2, (num_nodes2, hidden_dim2), dtype=jnp.float32)
    summary2 = jax.random.normal(k_s2, (hidden_dim2,), dtype=jnp.float32)

    out2 = discriminator_forward(x2, weight2, summary2, tile_n=64)
    jax.block_until_ready(out2)
    ref2 = x2 @ (weight2 @ summary2)
    assert out2.shape == (num_nodes2,)
    assert jnp.allclose(out2, ref2, atol=1e-4, rtol=1e-4)

    # Case 3: bf16 inputs (halved HBM traffic for the streamed x), larger N/H,
    # dtype-aware 16-row sublane rounding, partial last tile.
    hidden_dim3, num_nodes3 = 256, 1000
    k_w3, k_x3, k_s3 = jax.random.split(key, 3)
    weight3 = init_discriminator_weight(k_w3, hidden_dim3).astype(jnp.bfloat16)
    x3 = jax.random.normal(
        k_x3, (num_nodes3, hidden_dim3), dtype=jnp.float32).astype(jnp.bfloat16)
    summary3 = jax.random.normal(
        k_s3, (hidden_dim3,), dtype=jnp.float32).astype(jnp.bfloat16)

    out3 = discriminator_forward(x3, weight3, summary3)
    jax.block_until_ready(out3)
    ref3 = x3.astype(jnp.float32) @ (
        weight3.astype(jnp.float32) @ summary3.astype(jnp.float32))
    assert out3.shape == (num_nodes3,)
    assert jnp.allclose(out3.astype(jnp.float32), ref3, atol=1e-1, rtol=2e-2)

    print("KERNEL_OK")
</pallas_src>

<mosaic_0001>
module attributes {stable_mosaic.version = 11 : i64} {
  func.func @_score_kernel(%arg0: i32, %arg1: memref<8x32xf32, #tpu.memory_space<vmem>>, %arg2: memref<1x32xf32, #tpu.memory_space<vmem>>, %arg3: memref<8x1xf32, #tpu.memory_space<vmem>>) attributes {dimension_semantics = [#tpu.dimension_semantics<parallel>], iteration_bounds = array<i64: 2>, scalar_prefetch = 0 : i64, scratch_operands = 0 : i64, tpu.core_type = #tpu.core_type<tc>, window_params = [{transform_indices = @transform_0, window_bounds = array<i64: 8, 32>}, {pipeline_mode = #tpu.pipeline_mode<synchronous>, transform_indices = @transform_1, window_bounds = array<i64: 1, 32>}, {transform_indices = @transform_2, window_bounds = array<i64: 8, 1>}]} {
    %c0 = arith.constant 0 : index
    %c0_0 = arith.constant 0 : index
    %0 = vector.load %arg1[%c0, %c0_0] : memref<8x32xf32, #tpu.memory_space<vmem>>, vector<8x32xf32>
    %c0_1 = arith.constant 0 : index
    %c0_2 = arith.constant 0 : index
    %1 = vector.load %arg2[%c0_1, %c0_2] : memref<1x32xf32, #tpu.memory_space<vmem>>, vector<1x32xf32>
    %2 = vector.broadcast %1 : vector<1x32xf32> to vector<8x32xf32>
    %3 = arith.mulf %0, %2 : vector<8x32xf32>
    %cst = arith.constant dense<0.000000e+00> : vector<8xf32>
    %4 = vector.multi_reduction <add>, %3, %cst [1] : vector<8x32xf32> to vector<8xf32>
    %5 = vector.shape_cast %4 : vector<8xf32> to vector<8x1xf32>
    %c0_3 = arith.constant 0 : index
    %c0_4 = arith.constant 0 : index
    %6 = vector.load %arg3[%c0_3, %c0_4] : memref<8x1xf32, #tpu.memory_space<vmem>>, vector<8x1xf32>
    tpu.vector_store %arg3[%c0_3, %c0_4], %5 {strides = array<i32>} : memref<8x1xf32, #tpu.memory_space<vmem>>, vector<8x1xf32>,
    return
  }
  func.func @transform_0(%arg0: i32) -> (i32, i32) {
    %c0_i32 = arith.constant 0 : i32
    %c0_i32_0 = arith.constant 0 : i32
    return %arg0, %c0_i32 : i32, i32
  }
  func.func @transform_1(%arg0: i32) -> (i32, i32) {
    %c0_i32 = arith.constant 0 : i32
    %c0_i32_0 = arith.constant 0 : i32
    %c0_i32_1 = arith.constant 0 : i32
    return %c0_i32, %c0_i32_0 : i32, i32
  }
  func.func @transform_2(%arg0: i32) -> (i32, i32) {
    %c0_i32 = arith.constant 0 : i32
    %c0_i32_0 = arith.constant 0 : i32
    return %arg0, %c0_i32 : i32, i32
  }
}

</mosaic_0001>

<bundles_post_ra>
// kernel: tpu_custom_call.1
= control target key start
LH: loop header
LB: loop body
LE: loop exit
PB: predicated region body
PF: predicated region fallthrough
CT: control target
= control target key end

     0   :  { %7 = vsyncpa [#allocation3], 0  ;;  %s481_s0 = inlined_call_operand.hbm [shape: f32[16,32], index: 0, kind: input, shape index: {}]   ;;  %s482_s1 = inlined_call_operand.vmem [shape: f32[1,32], index: 1, kind: input, shape index: {}]   ;;  %s483_s2 = inlined_call_operand.vmem [shape: f32[16,1], index: 2, kind: output, shape index: {}]  }
   0x1   :  { %9 = vsyncpa [#allocation3 + $0x1], 0  ;;  %s371_s9 = smov 0   ;;  %s373_s10 = smov 0  }
   0x2   :  { %s375_s11 = smov 0   ;;  %s377_s12 = smov 0  }
   0x3 LB: > { %s390_s13 = sadd.s32 4294967295, %s353_s12   ;;  %s393_s14 = sadd.s32 1, %s353_s12   ;;  %s353_s12 = sphi %s377_s12, %s491_s12   ;;  %s349_s11 = sphi %s375_s11, %s490_s11   ;;  %s345_s10 = sphi %s373_s10, %s489_s10   ;;  %s341_s9 = sphi %s371_s9, %s488_s9  }
   0x4   : > { %s19_s15 = ssub.s32 %s353_s12, %s393_s14  ;;  %s22_s16 = sadd.s32 1, %s349_s11 }
   0x5   : > { %p20_p0 = scmp.eq.s32.totalorder %s19_s15, 0  ;;  %p29_p1 = scmp.ne.s32.totalorder %s349_s11, %s345_s10 }
   0x6   : > { %p30_p2 = scmp.eq.s32.totalorder %s353_s12, 0  ;;  %p35_p3 = scmp.ne.s32.totalorder %s345_s10, %s341_s9 }
   0x7   : > { %s403_s17 = scalar_select %p20_p0, %s349_s11, %s22_s16  }
   0x8   : > { %p31_p4 = por %p30_p2, %p29_p1  ;;  %p36_p5 = scmp.eq.s32.totalorder %s390_s13, 0 }
   0x9   : > { %p256_p6 = scmp.lt.s32.totalorder %s353_s12, 2  ;;  %s109_s19 = sand.u32 1, %s349_s11  }
   0xa   : > { %p407_p7 = por %p36_p5, %p35_p3  ;;  %s242_s20 = sshll.u32 %s109_s19, 3 }
   0xb   : > { %s243_s21 = sshll.u32 %s353_s12, 7  ;;  %s113_s25 = scalar_lea.vmem [#allocation2], %s242_s20 }
   0xc   : > { %s416_s24 = scalar_lea.hbm %s481_s0, %s243_s21  ;;  %s120_s26 = sshll.u32 %s113_s25, 4  ;;  %s418_s26 = int_to_ptr.vmem [resolvable:$true] %s120_s26 }
   0xd   : > { %p420_p8 = pnand %p256_p6, %p31_p4  ;;  %s110_s28 = scalar_lea.sflag [#allocation3], %s109_s19 }
   0xe   : > { %s289_s29 = scalar_lea.hbm %s416_s24, 128  ;;  %s294_s4 = scalar_lea.hbm %s481_s0, 256 }
   0xf   : > { %p290_p11 = scmp.ne.s32.totalorder %s416_s24, %s289_s29  ;;  %p291_p12 = pneg %p420_p8 }
  0x10   : > { %p295_p1 = scmp.lt.u32.totalorder %s416_s24, %s481_s0  ;;  %p296_p2 = scmp.lt.u32.totalorder %s294_s4, %s289_s29 }
  0x11   : > { %p292_p13 = pnand %p291_p12, %p290_p11  ;;  %p298_p4 = scmp.lt.u32.totalorder %s289_s29, %s416_s24 }
  0x12   : > { %p297_p3 = por %p296_p2, %p295_p1 }
  0x13   : > { %p293_p0 = pneg %p292_p13 }
  0x14   : > { %p299_p5 = por %p298_p4, %p297_p3 }
  0x16   : > { %p300_p6 = pnand %p299_p5, %p293_p0 }
  0x18   : > { %303 = shalt.err (!%p300_p6)
}
  0x19   : > { %s304_s7 = scalar_lea.vmem %s418_s26, 128  ;;  %s355_s8 = smov [#allocation2]  }
  0x1a   : > { %p305_p11 = scmp.ne.s32.totalorder %s418_s26, %s304_s7  ;;  %s309_s9 = sshll.u32 %s355_s8, 4  ;;  %s310_s9 = int_to_ptr.vmem [resolvable:$false] %s309_s9 }
  0x1b   : > { %s311_s15 = scalar_lea.vmem %s310_s9, 256  ;;  %p312_p10 = scmp.lt.s32.totalorder %s418_s26, %s310_s9 }
  0x1c   : > { %p307_p13 = pnand %p305_p11, %p291_p12  ;;  %p313_p1 = scmp.lt.s32.totalorder %s311_s15, %s304_s7 }
  0x1e   : > { %p308_p9 = pneg %p307_p13  ;;  %p314_p2 = por %p313_p1, %p312_p10 }
  0x20   : > { %p315_p3 = pnand %p314_p2, %p308_p9 }
  0x22   : > { %318 = shalt.err (!%p315_p3)
}
  0x23   : > { %255 = dma.hbm_to_vmem [thread:$0]  (!%p420_p8), %s416_s24, 128, %s418_s26, %s110_s28  }
  0x24   : > { %p486_p0 = scmp.lt.s32.totalorder %s353_s12, 3  ;;  %p487_p4 = scmp.ge.s32.totalorder %s353_s12, 1 }
  0x26   : > { %p126_p12 = pnand %p487_p4, %p486_p0 }
  0x27   : > { %s131_s16 = sand.u32 (!%p126_p12), 1, %s345_s10  }
  0x28   : > { %129 = sbr.rel (%p126_p12) target bundleno = 196 (0xc4), region = 28  ;;  %s245_s19 = sshll.u32 (!%p126_p12), %s131_s16, 3 }
  0x29   : > { %s132_s20 = scalar_lea.sflag (!%p126_p12), [#allocation3], %s131_s16  ;;  %s135_s21 = scalar_lea.vmem (!%p126_p12), [#allocation2], %s245_s19 }
  0x2f   : > { %336 = dma.done.wait (%p407_p7), %s132_s20, 128  }
  0x30   : > { %338 = vsyncadd (%p407_p7), %s132_s20, 4294967168  ;;  %v159_v0 = vld [vmem:[%s135_s21] sm:$0xff]  ;;  %vm168_vm0 = vcmask 261120   ;;  %p155_p8 = scmp.lt.s32.totalorder %s390_s13, 1  ;;  %vm172_vm1 = vcmask 7168  }
  0x31   : > { %v247_v1 = vld [vmem:[%s482_s1] ss:$0 sm:$0xff] }
  0x32   : > { %v167_v2 = vmul.f32 %v247_v1, %v159_v0  ;;  %s493_s13 = smov (!%p155_p8, %s390_s13), 1 }
  0x33   : > { %s246_s12 = sshll.u32 %s493_s13, 3 }
  0x34   : > { %v169_v3 = vsel %vm168_vm0, %v167_v2, 0.0  ;;  %s158_s26 = scalar_lea.vmem %s483_s2, %s246_s12 }
  0x35   : > { %170 = vadd.xlane.f32.xlu0 %v169_v3 }
  0xc2   : > { %v171_v4 = vpop.xlane.xlu0 %170 }
  0xc3   : > { %173 = vst.msk [vmem:[%s158_s26] sm:$0xff] %vm172_vm1, %v171_v4 }
  0xc4 PF: > { %p12_p7 = scmp.ge.s32.totalorder %s393_s14, 4   ;;  %s488_s9 = smov %s345_s10 }
  0xc5   : > { %s489_s10 = smov %s349_s11  ;;  %s490_s11 = smov %s403_s17 }
  0xc6   : > { %s491_s12 = smov %s393_s14  ;;  %14 = sbr.rel (!%p12_p7) target bundleno = 3 (0x3), region = 68 }
  0xcd   :  { %193 = vsyncpa [#allocation3], 1 }
  0xce   :  { %195 = vsyncpa [#allocation3 + $0x1], 1 }

</bundles_post_ra>
